<compile_context>
chip_gen: v7x
topology: tpu7x:2x2x1
jax: 0.10.0
libtpu: 0.0.40
codegen_flags: <defaults>
</compile_context>

<pallas_src>
import jax
import jax.numpy as jnp
from jax import lax
from jax.experimental import pallas as pl
from jax.experimental.pallas import tpu as pltpu


# ---------------------------- Pallas kernel ----------------------------

def _weak_loss_kernel(xs_ref, xs_roll_ref, xt_ref, w_ref, out_ref):
    """Fully fused per-batch WeakLoss pass.

    xs_ref      : (1, N, Cin) source image tokens, batch b       (positive pair)
    xs_roll_ref : (1, N, Cin) source image tokens, batch (b+1)%B (negative pair)
    xt_ref      : (1, N, Cin) target image tokens, batch b (shared by both pairs)
    w_ref       : (Cin, Cf)   1x1-conv weight
    out_ref     : (1, 2, 128) lane-dense slab:
                  out[0,0,:] = pos partial sum,  out[0,1,:] = neg partial sum
                  partial = sum_i max_j softmax_j(corr[i,:])
                          + sum_j max_i softmax_i(corr[:,j])
    """
    w = w_ref[...]

    def feat(x):
        # 1x1-conv channel mixing + L2 feature normalisation
        f = jnp.dot(x, w, preferred_element_type=jnp.float32)
        return f * lax.rsqrt(jnp.sum(f * f, axis=-1, keepdims=True) + 1e-6)

    fb = feat(xt_ref[0])                 # (N, Cf) target features, resident for both pairs
    dn = (((1,), (1,)), ((), ()))        # contract last dims of both operands -> no fb.T copy

    def score_partial(fa):
        # corr[i,j] = <fa[i], fb[j]>  (cosine similarities, bounded in [-1, 1])
        m = lax.dot_general(fa, fb, dimension_numbers=dn,
                            preferred_element_type=jnp.float32)      # (N, N)
        # max_i softmax_i(x) = 1 / sum_i exp(x_i - max_i x_i)
        col_max = jnp.max(m, axis=0, keepdims=True)                  # (1, N)
        e = jnp.exp(m - col_max)                                     # (N, N) - only NxN exp
        sb = pl.reciprocal(jnp.sum(e, axis=0, keepdims=True),
                           approx=True)                              # scores_B (EUP)
        # shared-exp trick: exp(m - row_max) = e * exp(col_max) * exp(-row_max)
        # (safe only because corr entries are in [-1, 1])
        row_max = jnp.max(m, axis=1, keepdims=True)                  # (N, 1)
        row_sum = jnp.exp(-row_max) * jnp.sum(e * jnp.exp(col_max),
                                              axis=1, keepdims=True)  # (N, 1)
        sa = pl.reciprocal(row_sum, approx=True)                     # scores_A (EUP)
        return jnp.sum(sa) + jnp.sum(sb)

    pos = score_partial(feat(xs_ref[0]))
    neg = score_partial(feat(xs_roll_ref[0]))
    # lane-dense (128-wide) stores; the tiny final mean stays in plain JAX.
    out_ref[0, 0:1, :] = jnp.full((1, 128), pos, dtype=jnp.float32)
    out_ref[0, 1:2, :] = jnp.full((1, 128), neg, dtype=jnp.float32)


# ---------------------------- wrapper ----------------------------

def weak_loss_forward(tnf_batch, w):
    """WeakLoss.forward: (batch-rolled) negative score - positive score."""
    src = tnf_batch['source_image']
    tgt = tnf_batch['target_image']
    B, Cin, H, W = src.shape
    N = H * W
    Cf = w.shape[1]

    # NCHW -> (B, tokens, channels); layout plumbing only, stays in XLA.
    src_tok = jnp.transpose(src, (0, 2, 3, 1)).reshape(B, N, Cin)
    tgt_tok = jnp.transpose(tgt, (0, 2, 3, 1)).reshape(B, N, Cin)

    sums = pl.pallas_call(
        _weak_loss_kernel,
        out_shape=jax.ShapeDtypeStruct((B, 2, 128), jnp.float32),
        grid=(B,),
        in_specs=[
            pl.BlockSpec((1, N, Cin), lambda b: (b, 0, 0)),            # source, positive pair
            pl.BlockSpec((1, N, Cin), lambda b: ((b + 1) % B, 0, 0)),  # rolled source, negative pair
            pl.BlockSpec((1, N, Cin), lambda b: (b, 0, 0)),            # target (shared by both)
            pl.BlockSpec((Cin, Cf), lambda b: (0, 0)),                 # 1x1-conv weight
        ],
        out_specs=pl.BlockSpec((1, 2, 128), lambda b: (b, 0, 0)),
        compiler_params=pltpu.CompilerParams(dimension_semantics=("parallel",)),
    )(src_tok, src_tok, tgt_tok, w)

    denom = 2.0 * B * N                      # mean over (B, N) elements, then /2
    score_pos = jnp.sum(sums[:, 0, 0]) / denom
    score_neg = jnp.sum(sums[:, 1, 0]) / denom
    return score_neg - score_pos


# ---------------------------- pure-JAX reference ----------------------------

def _weak_loss_ref(src, tgt, w):
    def corr_fn(s, t):
        B, Cin, H, W = s.shape
        fa = jnp.transpose(s, (0, 2, 3, 1)).reshape(B, H * W, Cin) @ w
        fb = jnp.transpose(t, (0, 2, 3, 1)).reshape(B, H * W, Cin) @ w
        fa = fa / jnp.sqrt(jnp.sum(fa * fa, -1, keepdims=True) + 1e-6)
        fb = fb / jnp.sqrt(jnp.sum(fb * fb, -1, keepdims=True) + 1e-6)
        return jnp.einsum('bic,bjc->bij', fa, fb)

    def score_fn(c):
        sb = jnp.max(jax.nn.softmax(c, axis=1), axis=1)
        sa = jnp.max(jax.nn.softmax(c, axis=2), axis=2)
        return jnp.mean(sa + sb) / 2.0

    sp = score_fn(corr_fn(src, tgt))
    sn = score_fn(corr_fn(src[jnp.roll(jnp.arange(src.shape[0]), -1)], tgt))
    return sn - sp


# ---------------------------- main ----------------------------

if __name__ == "__main__":
    B, Cin, H, W, Cf = 2, 4, 8, 8, 32   # image_size = 8, feature channels = 32

    key = jax.random.PRNGKey(0)
    k_src, k_tgt, k_w = jax.random.split(key, 3)
    src = jax.random.normal(k_src, (B, Cin, H, W), dtype=jnp.float32)
    tgt = jax.random.normal(k_tgt, (B, Cin, H, W), dtype=jnp.float32)
    # deterministic synthetic 1x1-conv weight for the feature-extraction "model"
    w = 0.1 * jax.random.normal(k_w, (Cin, Cf), dtype=jnp.float32)

    tnf_batch = {'source_image': src, 'target_image': tgt}

    loss = jax.jit(weak_loss_forward)(tnf_batch, w)
    jax.block_until_ready(loss)

    ref = _weak_loss_ref(src, tgt, w)
    # tolerance relaxed slightly vs 1e-4: pl.reciprocal(approx=True) introduces
    # a small relative error in the per-position scores (EUP approximate rcp).
    assert jnp.allclose(loss, ref, atol=1e-3, rtol=1e-3), (loss, ref)

    print("KERNEL_OK")
</pallas_src>

<mosaic_0001>
module attributes {stable_mosaic.version = 11 : i64} {
  func.func @_weak_loss_kernel(%arg0: i32, %arg1: memref<1x64x4xf32, #tpu.memory_space<vmem>>, %arg2: memref<1x64x4xf32, #tpu.memory_space<vmem>>, %arg3: memref<1x64x4xf32, #tpu.memory_space<vmem>>, %arg4: memref<4x32xf32, #tpu.memory_space<vmem>>, %arg5: memref<1x2x128xf32, #tpu.memory_space<vmem>>) attributes {dimension_semantics = [#tpu.dimension_semantics<parallel>], iteration_bounds = array<i64: 2>, scalar_prefetch = 0 : i64, scratch_operands = 0 : i64, tpu.core_type = #tpu.core_type<tc>, window_params = [{transform_indices = @transform_0, window_bounds = array<i64: 1, 64, 4>}, {transform_indices = @transform_1, window_bounds = array<i64: 1, 64, 4>}, {transform_indices = @transform_2, window_bounds = array<i64: 1, 64, 4>}, {pipeline_mode = #tpu.pipeline_mode<synchronous>, transform_indices = @transform_3, window_bounds = array<i64: 4, 32>}, {transform_indices = @transform_4, window_bounds = array<i64: 1, 2, 128>}]} {
    %c0 = arith.constant 0 : index
    %c0_0 = arith.constant 0 : index
    %0 = vector.load %arg4[%c0, %c0_0] : memref<4x32xf32, #tpu.memory_space<vmem>>, vector<4x32xf32>
    %c0_1 = arith.constant 0 : index
    %c0_2 = arith.constant 0 : index
    %c0_3 = arith.constant 0 : index
    %1 = vector.load %arg3[%c0_1, %c0_2, %c0_3] : memref<1x64x4xf32, #tpu.memory_space<vmem>>, vector<1x64x4xf32>
    %2 = vector.shape_cast %1 : vector<1x64x4xf32> to vector<64x4xf32>
    %cst = arith.constant dense<0.000000e+00> : vector<64x32xf32>
    %3 = tpu.matmul %2, %0, %cst {dimension_numbers = #tpu.dot_dimension_numbers<[1], [0], [0], [1], [0, 0, 1, 1], [], []>} : vector<64x4xf32>, vector<4x32xf32>, vector<64x32xf32> -> vector<64x32xf32>
    %4 = arith.mulf %3, %3 : vector<64x32xf32>
    %cst_4 = arith.constant dense<0.000000e+00> : vector<64xf32>
    %5 = vector.multi_reduction <add>, %4, %cst_4 [1] : vector<64x32xf32> to vector<64xf32>
    %6 = vector.shape_cast %5 : vector<64xf32> to vector<64x1xf32>
    %cst_5 = arith.constant 9.99999997E-7 : f32
    %7 = vector.broadcast %cst_5 : f32 to vector<64x1xf32>
    %8 = arith.addf %6, %7 : vector<64x1xf32>
    %9 = math.rsqrt %8 : vector<64x1xf32>
    %10 = vector.broadcast %9 : vector<64x1xf32> to vector<64x32xf32>
    %11 = arith.mulf %3, %10 : vector<64x32xf32>
    %c0_6 = arith.constant 0 : index
    %c0_7 = arith.constant 0 : index
    %c0_8 = arith.constant 0 : index
    %12 = vector.load %arg1[%c0_6, %c0_7, %c0_8] : memref<1x64x4xf32, #tpu.memory_space<vmem>>, vector<1x64x4xf32>
    %13 = vector.shape_cast %12 : vector<1x64x4xf32> to vector<64x4xf32>
    %cst_9 = arith.constant dense<0.000000e+00> : vector<64x32xf32>
    %14 = tpu.matmul %13, %0, %cst_9 {dimension_numbers = #tpu.dot_dimension_numbers<[1], [0], [0], [1], [0, 0, 1, 1], [], []>} : vector<64x4xf32>, vector<4x32xf32>, vector<64x32xf32> -> vector<64x32xf32>
    %15 = arith.mulf %14, %14 : vector<64x32xf32>
    %cst_10 = arith.constant dense<0.000000e+00> : vector<64xf32>
    %16 = vector.multi_reduction <add>, %15, %cst_10 [1] : vector<64x32xf32> to vector<64xf32>
    %17 = vector.shape_cast %16 : vector<64xf32> to vector<64x1xf32>
    %cst_11 = arith.constant 9.99999997E-7 : f32
    %18 = vector.broadcast %cst_11 : f32 to vector<64x1xf32>
    %19 = arith.addf %17, %18 : vector<64x1xf32>
    %20 = math.rsqrt %19 : vector<64x1xf32>
    %21 = vector.broadcast %20 : vector<64x1xf32> to vector<64x32xf32>
    %22 = arith.mulf %14, %21 : vector<64x32xf32>
    %cst_12 = arith.constant dense<0.000000e+00> : vector<64x64xf32>
    %23 = tpu.matmul %22, %11, %cst_12 {dimension_numbers = #tpu.dot_dimension_numbers<[1], [1], [0], [0], [0, 0, 1, 0], [], []>} : vector<64x32xf32>, vector<64x32xf32>, vector<64x64xf32> -> vector<64x64xf32>
    %cst_13 = arith.constant dense<0xFF800000> : vector<64xf32>
    %24 = vector.multi_reduction <maximumf>, %23, %cst_13 [0] : vector<64x64xf32> to vector<64xf32>
    %25 = vector.shape_cast %24 : vector<64xf32> to vector<1x64xf32>
    %26 = vector.broadcast %25 : vector<1x64xf32> to vector<64x64xf32>
    %27 = arith.subf %23, %26 : vector<64x64xf32>
    %28 = math.exp %27 : vector<64x64xf32>
    %cst_14 = arith.constant dense<0.000000e+00> : vector<64xf32>
    %29 = vector.multi_reduction <add>, %28, %cst_14 [0] : vector<64x64xf32> to vector<64xf32>
    %30 = vector.shape_cast %29 : vector<64xf32> to vector<1x64xf32>
    %31 = tpu.reciprocal %30 {approx = true} : vector<1x64xf32> -> vector<1x64xf32>
    %cst_15 = arith.constant dense<0xFF800000> : vector<64xf32>
    %32 = vector.multi_reduction <maximumf>, %23, %cst_15 [1] : vector<64x64xf32> to vector<64xf32>
    %33 = vector.shape_cast %32 : vector<64xf32> to vector<64x1xf32>
    %cst_16 = arith.constant 0.000000e+00 : f32
    %34 = vector.broadcast %cst_16 : f32 to vector<64x1xf32>
    %35 = arith.subf %34, %33 : vector<64x1xf32>
    %36 = math.exp %35 : vector<64x1xf32>
    %37 = math.exp %25 : vector<1x64xf32>
    %38 = vector.broadcast %37 : vector<1x64xf32> to vector<64x64xf32>
    %39 = arith.mulf %28, %38 : vector<64x64xf32>
    %cst_17 = arith.constant dense<0.000000e+00> : vector<64xf32>
    %40 = vector.multi_reduction <add>, %39, %cst_17 [1] : vector<64x64xf32> to vector<64xf32>
    %41 = vector.shape_cast %40 : vector<64xf32> to vector<64x1xf32>
    %42 = arith.mulf %36, %41 : vector<64x1xf32>
    %43 = tpu.reciprocal %42 {approx = true} : vector<64x1xf32> -> vector<64x1xf32>
    %44 = vector.shape_cast %43 : vector<64x1xf32> to vector<1x64x1xf32>
    %cst_18 = arith.constant dense<0.000000e+00> : vector<1xf32>
    %45 = vector.multi_reduction <add>, %44, %cst_18 [1, 2] : vector<1x64x1xf32> to vector<1xf32>
    %46 = vector.shape_cast %45 : vector<1xf32> to vector<1x1x1xf32>
    %47 = vector.extract %46[0, 0, 0] : f32 from vector<1x1x1xf32>
    %48 = vector.shape_cast %31 : vector<1x64xf32> to vector<1x1x64xf32>
    %cst_19 = arith.constant dense<0.000000e+00> : vector<1xf32>
    %49 = vector.multi_reduction <add>, %48, %cst_19 [1, 2] : vector<1x1x64xf32> to vector<1xf32>
    %50 = vector.shape_cast %49 : vector<1xf32> to vector<1x1x1xf32>
    %51 = vector.extract %50[0, 0, 0] : f32 from vector<1x1x1xf32>
    %52 = arith.addf %47, %51 : f32
    %c0_20 = arith.constant 0 : index
    %c0_21 = arith.constant 0 : index
    %c0_22 = arith.constant 0 : index
    %53 = vector.load %arg2[%c0_20, %c0_21, %c0_22] : memref<1x64x4xf32, #tpu.memory_space<vmem>>, vector<1x64x4xf32>
    %54 = vector.shape_cast %53 : vector<1x64x4xf32> to vector<64x4xf32>
    %cst_23 = arith.constant dense<0.000000e+00> : vector<64x32xf32>
    %55 = tpu.matmul %54, %0, %cst_23 {dimension_numbers = #tpu.dot_dimension_numbers<[1], [0], [0], [1], [0, 0, 1, 1], [], []>} : vector<64x4xf32>, vector<4x32xf32>, vector<64x32xf32> -> vector<64x32xf32>
    %56 = arith.mulf %55, %55 : vector<64x32xf32>
    %cst_24 = arith.constant dense<0.000000e+00> : vector<64xf32>
    %57 = vector.multi_reduction <add>, %56, %cst_24 [1] : vector<64x32xf32> to vector<64xf32>
    %58 = vector.shape_cast %57 : vector<64xf32> to vector<64x1xf32>
    %cst_25 = arith.constant 9.99999997E-7 : f32
    %59 = vector.broadcast %cst_25 : f32 to vector<64x1xf32>
    %60 = arith.addf %58, %59 : vector<64x1xf32>
    %61 = math.rsqrt %60 : vector<64x1xf32>
    %62 = vector.broadcast %61 : vector<64x1xf32> to vector<64x32xf32>
    %63 = arith.mulf %55, %62 : vector<64x32xf32>
    %cst_26 = arith.constant dense<0.000000e+00> : vector<64x64xf32>
    %64 = tpu.matmul %63, %11, %cst_26 {dimension_numbers = #tpu.dot_dimension_numbers<[1], [1], [0], [0], [0, 0, 1, 0], [], []>} : vector<64x32xf32>, vector<64x32xf32>, vector<64x64xf32> -> vector<64x64xf32>
    %cst_27 = arith.constant dense<0xFF800000> : vector<64xf32>
    %65 = vector.multi_reduction <maximumf>, %64, %cst_27 [0] : vector<64x64xf32> to vector<64xf32>
    %66 = vector.shape_cast %65 : vector<64xf32> to vector<1x64xf32>
    %67 = vector.broadcast %66 : vector<1x64xf32> to vector<64x64xf32>
    %68 = arith.subf %64, %67 : vector<64x64xf32>
    %69 = math.exp %68 : vector<64x64xf32>
    %cst_28 = arith.constant dense<0.000000e+00> : vector<64xf32>
    %70 = vector.multi_reduction <add>, %69, %cst_28 [0] : vector<64x64xf32> to vector<64xf32>
    %71 = vector.shape_cast %70 : vector<64xf32> to vector<1x64xf32>
    %72 = tpu.reciprocal %71 {approx = true} : vector<1x64xf32> -> vector<1x64xf32>
    %cst_29 = arith.constant dense<0xFF800000> : vector<64xf32>
    %73 = vector.multi_reduction <maximumf>, %64, %cst_29 [1] : vector<64x64xf32> to vector<64xf32>
    %74 = vector.shape_cast %73 : vector<64xf32> to vector<64x1xf32>
    %cst_30 = arith.constant 0.000000e+00 : f32
    %75 = vector.broadcast %cst_30 : f32 to vector<64x1xf32>
    %76 = arith.subf %75, %74 : vector<64x1xf32>
    %77 = math.exp %76 : vector<64x1xf32>
    %78 = math.exp %66 : vector<1x64xf32>
    %79 = vector.broadcast %78 : vector<1x64xf32> to vector<64x64xf32>
    %80 = arith.mulf %69, %79 : vector<64x64xf32>
    %cst_31 = arith.constant dense<0.000000e+00> : vector<64xf32>
    %81 = vector.multi_reduction <add>, %80, %cst_31 [1] : vector<64x64xf32> to vector<64xf32>
    %82 = vector.shape_cast %81 : vector<64xf32> to vector<64x1xf32>
    %83 = arith.mulf %77, %82 : vector<64x1xf32>
    %84 = tpu.reciprocal %83 {approx = true} : vector<64x1xf32> -> vector<64x1xf32>
    %85 = vector.shape_cast %84 : vector<64x1xf32> to vector<1x64x1xf32>
    %cst_32 = arith.constant dense<0.000000e+00> : vector<1xf32>
    %86 = vector.multi_reduction <add>, %85, %cst_32 [1, 2] : vector<1x64x1xf32> to vector<1xf32>
    %87 = vector.shape_cast %86 : vector<1xf32> to vector<1x1x1xf32>
    %88 = vector.extract %87[0, 0, 0] : f32 from vector<1x1x1xf32>
    %89 = vector.shape_cast %72 : vector<1x64xf32> to vector<1x1x64xf32>
    %cst_33 = arith.constant dense<0.000000e+00> : vector<1xf32>
    %90 = vector.multi_reduction <add>, %89, %cst_33 [1, 2] : vector<1x1x64xf32> to vector<1xf32>
    %91 = vector.shape_cast %90 : vector<1xf32> to vector<1x1x1xf32>
    %92 = vector.extract %91[0, 0, 0] : f32 from vector<1x1x1xf32>
    %93 = arith.addf %88, %92 : f32
    %94 = vector.broadcast %52 : f32 to vector<1x128xf32>
    %c0_34 = arith.constant 0 : index
    %c0_35 = arith.constant 0 : index
    %c0_36 = arith.constant 0 : index
    %95 = vector.load %arg5[%c0_34, %c0_35, %c0_36] : memref<1x2x128xf32, #tpu.memory_space<vmem>>, vector<1x1x128xf32>
    %96 = vector.shape_cast %95 : vector<1x1x128xf32> to vector<1x128xf32>
    %97 = vector.shape_cast %94 : vector<1x128xf32> to vector<1x1x128xf32>
    tpu.vector_store %arg5[%c0_34, %c0_35, %c0_36], %97 {strides = array<i32>} : memref<1x2x128xf32, #tpu.memory_space<vmem>>, vector<1x1x128xf32>,
    %98 = vector.broadcast %93 : f32 to vector<1x128xf32>
    %c0_37 = arith.constant 0 : index
    %c1 = arith.constant 1 : index
    %c0_38 = arith.constant 0 : index
    %99 = vector.load %arg5[%c0_37, %c1, %c0_38] : memref<1x2x128xf32, #tpu.memory_space<vmem>>, vector<1x1x128xf32>
    %100 = vector.shape_cast %99 : vector<1x1x128xf32> to vector<1x128xf32>
    %101 = vector.shape_cast %98 : vector<1x128xf32> to vector<1x1x128xf32>
    tpu.vector_store %arg5[%c0_37, %c1, %c0_38], %101 {strides = array<i32>} : memref<1x2x128xf32, #tpu.memory_space<vmem>>, vector<1x1x128xf32>,
    return
  }
  func.func @transform_0(%arg0: i32) -> (i32, i32, i32) {
    %c0_i32 = arith.constant 0 : i32
    %c0_i32_0 = arith.constant 0 : i32
    %c0_i32_1 = arith.constant 0 : i32
    return %arg0, %c0_i32, %c0_i32_0 : i32, i32, i32
  }
  func.func @transform_1(%arg0: i32) -> (i32, i32, i32) {
    %c1_i32 = arith.constant 1 : i32
    %0 = arith.addi %arg0, %c1_i32 : i32
    %c2_i32 = arith.constant 2 : i32
    %c0_i32 = arith.constant 0 : i32
    %1 = arith.cmpi eq, %c2_i32, %c0_i32 : i32
    %c1_i32_0 = arith.constant 1 : i32
    %2 = arith.select %1, %c1_i32_0, %c2_i32 : i32
    %3 = arith.remsi %0, %2 : i32
    %c0_i32_1 = arith.constant 0 : i32
    %4 = arith.cmpi ne, %3, %c0_i32_1 : i32
    %c0_i32_2 = arith.constant 0 : i32
    %5 = arith.cmpi slt, %3, %c0_i32_2 : i32
    %c0_i32_3 = arith.constant 0 : i32
    %6 = arith.cmpi slt, %2, %c0_i32_3 : i32
    %7 = arith.xori %5, %6 : i1
    %8 = arith.andi %7, %4 : i1
    %9 = arith.addi %3, %2 : i32
    %10 = arith.select %8, %9, %3 : i32
    %c0_i32_4 = arith.constant 0 : i32
    %c0_i32_5 = arith.constant 0 : i32
    %c0_i32_6 = arith.constant 0 : i32
    return %10, %c0_i32_4, %c0_i32_5 : i32, i32, i32
  }
  func.func @transform_2(%arg0: i32) -> (i32, i32, i32) {
    %c0_i32 = arith.constant 0 : i32
    %c0_i32_0 = arith.constant 0 : i32
    %c0_i32_1 = arith.constant 0 : i32
    return %arg0, %c0_i32, %c0_i32_0 : i32, i32, i32
  }
  func.func @transform_3(%arg0: i32) -> (i32, i32) {
    %c0_i32 = arith.constant 0 : i32
    %c0_i32_0 = arith.constant 0 : i32
    %c0_i32_1 = arith.constant 0 : i32
    return %c0_i32, %c0_i32_0 : i32, i32
  }
  func.func @transform_4(%arg0: i32) -> (i32, i32, i32) {
    %c0_i32 = arith.constant 0 : i32
    %c0_i32_0 = arith.constant 0 : i32
    %c0_i32_1 = arith.constant 0 : i32
    return %arg0, %c0_i32, %c0_i32_0 : i32, i32, i32
  }
}

</mosaic_0001>

<bundles_post_ra>
// kernel: weak_loss_forward.1
= control target key start
LH: loop header
LB: loop body
LE: loop exit
PB: predicated region body
PF: predicated region fallthrough
CT: control target
= control target key end

     0   :  { %s2154_s15 = smov 0   ;;  %s2579_s0 = inlined_call_operand.vmem [shape: f32[2,64,4], index: 0, kind: input, shape index: {}, may-alias: {0,1}]   ;;  %s2580_s1 = inlined_call_operand.vmem [shape: f32[2,64,4], index: 1, kind: input, shape index: {}, may-alias: {0,1}]   ;;  %s2581_s2 = inlined_call_operand.vmem [shape: f32[2,64,4], index: 2, kind: input, shape index: {}]   ;;  %s2582_s3 = inlined_call_operand.vmem [shape: f32[4,32], index: 3, kind: input, shape index: {}]   ;;  %s2583_s4 = inlined_call_operand.vmem [shape: f32[2,2,128], index: 4, kind: output, shape index: {}]  }
   0x1 LB: > { %s1663_s16 = sadd.s32 4294967295, %s2127_s15   ;;  %p1673_p0 = scmp.ge.s32.totalorder %s2127_s15, 1  ;;  %s2127_s15 = sphi %s2154_s15, %s14_s15  }
   0x2   : > { %p234_p1 = scmp.lt.s32.totalorder %s2127_s15, 3 }
   0x4   : > { %p235_p2 = pnand %p1673_p0, %p234_p1 }
   0x5   : > { %v327_v0 = vld [vmem:[%s2582_s3] sm:$0xf] (!%p235_p2)  ;;  %vm361_vm0 = vcmask (!%p235_p2), 1043456   ;;  %p282_p3 = scmp.lt.s32.totalorder (!%p235_p2), %s1663_s16, 1  ;;  %s287_s19 = sadd.s32 (!%p235_p2), 1, %s1663_s16  ;;  %vm336_vm1 = vcmask (!%p235_p2), 31744  }
   0x6   : > { %238 = sbr.rel (%p235_p2) target bundleno = 1101 (0x44d), region = 36  ;;  %1807 = vmatprep.subr.msk.mxu0 (!%p235_p2), %vm361_vm0, %v327_v0  ;;  %1821 = vmatprep.subr.msk.mxu1 (!%p235_p2), %vm361_vm0, %v327_v0  ;;  %s289_s20 = ssub.s32 (!%p235_p2), 0, %s287_s19  ;;  %vm478_vm2 = vcmask (!%p235_p2), 261120   ;;  %vm873_vm4 = vcmask (!%p235_p2), 523264   ;;  %vm1056_vm5 = vcmask (!%p235_p2), 516096   ;;  %vm1031_vm6 = vcmask (!%p235_p2), 7168  }
   0x7   : > { %1808 = vmatpush3.msk.msra.mxu0 (!%p235_p2), %vm361_vm0, %v327_v0  ;;  %1822 = vmatpush3.msk.msra.mxu1 (!%p235_p2), %vm361_vm0, %v327_v0  ;;  %p288_p4 = scmp.lt.s32.totalorder (!%p235_p2), %s287_s19, 0  ;;  %s1676_s21 = smin.u32 (!%p235_p2), %s289_s20, %s287_s19  ;;  %vm2352_vm3 = vmpackc.low (!%p235_p2), %vm478_vm2, %vm478_vm2 }
   0x8   : > { %1863 = vmatprep.subr.msk.mxu1 (!%p235_p2), %vm361_vm0, %v327_v0  ;;  %s291_s23 = sand.u32 (!%p235_p2), 1, %s1676_s21  }
   0x9   : > { %s292_s30 = ssub.s32 (!%p235_p2), 0, %s291_s23 }
   0xd   : > { %s2587_s16 = smov (!%p282_p3, %s1663_s16), 1  ;;  %s2589_s30 = smov (!%p288_p4, %s292_s30), %s291_s23 }
   0xe   : > { %s1745_s22 = sshll.u32 %s2587_s16, 6  ;;  %p1678_p5 = scmp.lt.s32.totalorder %s2589_s30, 0 }
   0xf   : > { %s2176_s26 = scalar_lea.vmem %s2581_s2, %s1745_s22  ;;  %s2181_s29 = scalar_lea.vmem %s2579_s0, %s1745_s22 }
  0x10   : > { %v328_v1 = vld [vmem:[%s2176_s26] sm:$0xff]  ;;  %v329_v2 = vld [vmem:[%s2176_s26 + $0x8] sm:$0xff]  ;;  %v330_v3 = vld [vmem:[%s2176_s26 + $0x10] sm:$0xff]  ;;  %s298_s5 = sadd.s32 2, %s2589_s30  ;;  %s1683_s10 = sshll.u32 %s2587_s16, 1 }
  0x11   : > { %1809 = vmatprep.mubr.msk.f32.mxu0 %vm336_vm1, %v328_v1  ;;  %v527_v4 = vld [vmem:[%s2181_s29] sm:$0xff]  ;;  %v528_v5 = vld [vmem:[%s2181_s29 + $0x8] sm:$0xff]  ;;  %v529_v6 = vld [vmem:[%s2181_s29 + $0x10] sm:$0xff]  ;;  %s2591_s5 = smov (!%p1678_p5, %s298_s5), %s2589_s30  ;;  %s326_s17 = scalar_lea.vmem %s2583_s4, %s1683_s10 }
  0x12   : > { %1810 = vmatmul.mubr.msk.f32.vlgmr.msra.gmra.mrb[0].mxu0 %vm336_vm1, %v329_v2  ;;  %1823 = vmatprep.mubr.msk.f32.mxu1 %vm336_vm1, %v527_v4  ;;  %v331_v7 = vld [vmem:[%s2176_s26 + $0x18] sm:$0xff]  ;;  %v332_v9 = vld [vmem:[%s2176_s26 + $0x20] sm:$0xff]  ;;  %v333_v11 = vld [vmem:[%s2176_s26 + $0x28] sm:$0xff]  ;;  %p300_p6 = scmp.lt.s32.totalorder %s2591_s5, 1 }
  0x13   : > { %1812 = vmatprep.mubr.msk.f32.mxu0 %vm336_vm1, %v330_v3  ;;  %1824 = vmatmul.mubr.msk.f32.vlgmr.msra.gmra.mrb[0].mxu1 %vm336_vm1, %v528_v5  ;;  %v530_v8 = vld [vmem:[%s2181_s29 + $0x18] sm:$0xff]  ;;  %v531_v10 = vld [vmem:[%s2181_s29 + $0x20] sm:$0xff]  ;;  %v532_v12 = vld [vmem:[%s2181_s29 + $0x28] sm:$0xff] }
  0x14   : > { %1826 = vmatprep.mubr.msk.f32.mxu1 %vm336_vm1, %v529_v6  ;;  %1864 = vmatpush3.msk.msra.mxu1 %vm361_vm0, %v327_v0  ;;  %v334_v13 = vld [vmem:[%s2176_s26 + $0x30] sm:$0xff]  ;;  %s2593_s5 = smov (!%p300_p6, %s2591_s5), 1  ;;  %v335_v15 = vld [vmem:[%s2176_s26 + $0x38] sm:$0xff] }
  0x15   : > { %v533_v14 = vld [vmem:[%s2181_s29 + $0x30] sm:$0xff]  ;;  %s1746_s6 = sshll.u32 %s2593_s5, 6  ;;  %v534_v16 = vld [vmem:[%s2181_s29 + $0x38] sm:$0xff] }
  0x16   : > { %1813 = vmatmul.mubr.msk.f32.gmra.mrb[2].mxu0 %vm336_vm1, %v331_v7  ;;  %s304_s9 = scalar_lea.vmem %s2580_s1, %s1746_s6 }
  0x17   : > { %1827 = vmatmul.mubr.msk.f32.gmra.mrb[2].mxu1 %vm336_vm1, %v530_v8  ;;  %1815 = vmatprep.mubr.msk.f32.mxu0 %vm336_vm1, %v332_v9  ;;  %v1068_v17 = vld [vmem:[%s304_s9] sm:$0xff]  ;;  %v1069_v18 = vld [vmem:[%s304_s9 + $0x8] sm:$0xff]  ;;  %v1070_v19 = vld [vmem:[%s304_s9 + $0x10] sm:$0xff] }
  0x18   : > { %1829 = vmatprep.mubr.msk.f32.mxu1 %vm336_vm1, %v531_v10  ;;  %v1071_v20 = vld [vmem:[%s304_s9 + $0x18] sm:$0xff]  ;;  %v1072_v21 = vld [vmem:[%s304_s9 + $0x20] sm:$0xff]  ;;  %v1073_v22 = vld [vmem:[%s304_s9 + $0x28] sm:$0xff] }
  0x19   : > { %v1074_v23 = vld [vmem:[%s304_s9 + $0x30] sm:$0xff]  ;;  %v1075_v24 = vld [vmem:[%s304_s9 + $0x38] sm:$0xff] }
  0x1a   : > { %1816 = vmatmul.mubr.msk.f32.gmra.mrb[4].mxu0 %vm336_vm1, %v333_v11 }
  0x1b   : > { %1830 = vmatmul.mubr.msk.f32.gmra.mrb[4].mxu1 %vm336_vm1, %v532_v12  ;;  %1818 = vmatprep.mubr.msk.f32.mxu0 %vm336_vm1, %v334_v13 }
  0x1c   : > { %1832 = vmatprep.mubr.msk.f32.mxu1 %vm336_vm1, %v533_v14 }
  0x1e   : > { %1819 = vmatmul.mubr.msk.f32.gmra.mrb[6].mxu0 %vm336_vm1, %v335_v15 }
  0x1f   : > { %1833 = vmatmul.mubr.msk.f32.gmra.mrb[6].mxu1 %vm336_vm1, %v534_v16 }
  0x20   : > { %1865 = vmatprep.mubr.msk.f32.mxu1 %vm336_vm1, %v1068_v17 }
  0x23   : > { %1866 = vmatmul.mubr.msk.f32.vlgmr.msra.gmra.mrb[8].mxu1 %vm336_vm1, %v1069_v18 }
  0x24   : > { %1868 = vmatprep.mubr.msk.f32.mxu1 %vm336_vm1, %v1070_v19 }
  0x27   : > { %1869 = vmatmul.mubr.msk.f32.gmra.mrb[10].mxu1 %vm336_vm1, %v1071_v20 }
  0x28   : > { %1871 = vmatprep.mubr.msk.f32.mxu1 %vm336_vm1, %v1072_v21 }
  0x2b   : > { %1872 = vmatmul.mubr.msk.f32.gmra.mrb[12].mxu1 %vm336_vm1, %v1073_v22 }
  0x2c   : > { %1874 = vmatprep.mubr.msk.f32.mxu1 %vm336_vm1, %v1074_v23 }
  0x2f   : > { %1875 = vmatmul.mubr.msk.f32.gmra.mrb[14].mxu1 %vm336_vm1, %v1075_v24 }
  0xe5   : > { %v2228_v25 = vpop.f32.mrb[0].mxu0 }
  0xe6   : > { %v2230_v26 = vpop.f32.mrb[1].mxu0  ;;  %v2232_v27 = vpop.f32.mrb[0].mxu1  ;;  %v471_v30 = vmul.f32 %v2228_v25, %v2228_v25 }
  0xe7   : > { %v470_v28 = vmul.f32 %v2230_v26, %v2230_v26  ;;  %v2236_v29 = vpop.f32.mrb[1].mxu1  ;;  %v665_v56 = vmul.f32 %v2232_v27, %v2232_v27 }
  0xe8   : > { %v664_v37 = vmul.f32 %v2236_v29, %v2236_v29  ;;  %v482_v40 = vsel %vm478_vm2, %v471_v30, 0.0 }
  0xe9   : > { %v2240_v31 = vpop.f32.mrb[2].mxu0  ;;  %v479_v32 = vsel %vm478_vm2, %v470_v28, 0.0  ;;  %v675_v62 = vsel %vm478_vm2, %v665_v56, 0.0 }
  0xea   : > { %480 = vadd.xlane.f32.xlu0 %v479_v32  ;;  %v473_v33 = vmul.f32 %v2240_v31, %v2240_v31  ;;  %v2245_v34 = vpop.f32.mrb[3].mxu0  ;;  %v2247_v35 = vpop.f32.mrb[2].mxu1  ;;  %v672_v47 = vsel %vm478_vm2, %v664_v37, 0.0 }
  0xeb   : > { %v472_v36 = vmul.f32 %v2245_v34, %v2245_v34  ;;  %v2253_v38 = vpop.f32.mrb[3].mxu1  ;;  %v667_v9 = vmul.f32 %v2247_v35, %v2247_v35 }
  0xec   : > { %v488_v39 = vsel %vm478_vm2, %v473_v33, 0.0  ;;  %v666_v4 = vmul.f32 %v2253_v38, %v2253_v38 }
  0xed   : > { %489 = vadd.xlane.f32.xlu1 %v488_v39  ;;  %v2257_v41 = vpop.f32.mrb[4].mxu0  ;;  %v485_v42 = vsel %vm478_vm2, %v472_v36, 0.0  ;;  %v681_v16 = vsel %vm478_vm2, %v667_v9, 0.0 }
  0xee   : > { %483 = vadd.xlane.f32.xlu0 %v482_v40  ;;  %v475_v43 = vmul.f32 %v2257_v41, %v2257_v41  ;;  %v2262_v44 = vpop.f32.mrb[5].mxu0  ;;  %v2264_v45 = vpop.f32.mrb[4].mxu1  ;;  %v678_v10 = vsel %vm478_vm2, %v666_v4, 0.0 }
  0xef   : > { %v474_v46 = vmul.f32 %v2262_v44, %v2262_v44  ;;  %v2269_v48 = vpop.f32.mrb[5].mxu1  ;;  %v669_v19 = vmul.f32 %v2264_v45, %v2264_v45 }
  0xf0   : > { %v494_v50 = vsel %vm478_vm2, %v475_v43, 0.0  ;;  %v668_v15 = vmul.f32 %v2269_v48, %v2269_v48 }
  0xf1   : > { %486 = vadd.xlane.f32.xlu1 %v485_v42  ;;  %v2271_v49 = vpop.f32.mrb[6].mxu0  ;;  %v491_v54 = vsel %vm478_vm2, %v474_v46, 0.0  ;;  %v687_v24 = vsel %vm478_vm2, %v669_v19, 0.0 }
  0xf2   : > { %673 = vadd.xlane.f32.xlu0 %v672_v47  ;;  %v477_v51 = vmul.f32 %v2271_v49, %v2271_v49  ;;  %v2276_v52 = vpop.f32.mrb[6].mxu1  ;;  %v2278_v53 = vpop.f32.mrb[7].mxu0  ;;  %v684_v20 = vsel %vm478_vm2, %v668_v15, 0.0 }
  0xf3   : > { %v2281_v55 = vpop.f32.mrb[7].mxu1  ;;  %v476_v60 = vmul.f32 %v2278_v53, %v2278_v53  ;;  %v671_v32 = vmul.f32 %v2276_v52, %v2276_v52 }
  0xf4   : > { %v500_v57 = vsel %vm478_vm2, %v477_v51, 0.0  ;;  %v670_v23 = vmul.f32 %v2281_v55, %v2281_v55 }
  0xf5   : > { %495 = vadd.xlane.f32.xlu1 %v494_v50  ;;  %v497_v2 = vsel %vm478_vm2, %v476_v60, 0.0  ;;  %v693_v39 = vsel %vm478_vm2, %v671_v32, 0.0 }
  0xf6   : > { %492 = vadd.xlane.f32.xlu0 %v491_v54  ;;  %v2286_v58 = vpop.f32.mrb[8].mxu1  ;;  %v690_v33 = vsel %vm478_vm2, %v670_v23, 0.0 }
  0xf7   : > { %v1206_v59 = vmul.f32 %v2286_v58, %v2286_v58  ;;  %v2292_v61 = vpop.f32.mrb[9].mxu1 }
  0xf8   : > { %v1205_v0 = vmul.f32 %v2292_v61, %v2292_v61 }
  0xf9   : > { %501 = vadd.xlane.f32.xlu1 %v500_v57  ;;  %v1216_v63 = vsel %vm478_vm2, %v1206_v59, 0.0 }
  0xfa   : > { %676 = vadd.xlane.f32.xlu0 %v675_v62  ;;  %v2298_v1 = vpop.f32.mrb[10].mxu1  ;;  %v1213_v5 = vsel %vm478_vm2, %v1205_v0, 0.0 }
  0xfb   : > { %v2301_v3 = vpop.f32.mrb[11].mxu1  ;;  %v1208_v6 = vmul.f32 %v2298_v1, %v2298_v1 }
  0xfc   : > { %v1207_v12 = vmul.f32 %v2301_v3, %v2301_v3 }
  0xfd   : > { %1217 = vadd.xlane.f32.xlu1 %v1216_v63  ;;  %v1222_v11 = vsel %vm478_vm2, %v1208_v6, 0.0 }
  0xfe   : > { %498 = vadd.xlane.f32.xlu0 %v497_v2  ;;  %v2308_v7 = vpop.f32.mrb[12].mxu1  ;;  %v1219_v17 = vsel %vm478_vm2, %v1207_v12, 0.0 }
  0xff   : > { %v2310_v8 = vpop.f32.mrb[13].mxu1  ;;  %v1210_v18 = vmul.f32 %v2308_v7, %v2308_v7 }
 0x100   : > { %v1209_v22 = vmul.f32 %v2310_v8, %v2310_v8 }
 0x101   : > { %1214 = vadd.xlane.f32.xlu1 %v1213_v5  ;;  %v1228_v21 = vsel %vm478_vm2, %v1210_v18, 0.0 }
 0x102   : > { %679 = vadd.xlane.f32.xlu0 %v678_v10  ;;  %v2318_v13 = vpop.f32.mrb[14].mxu1  ;;  %v1225_v28 = vsel %vm478_vm2, %v1209_v22, 0.0 }
 0x103   : > { %v2320_v14 = vpop.f32.mrb[15].mxu1  ;;  %v1212_v36 = vmul.f32 %v2318_v13, %v2318_v13 }
 0x104   : > { %v1211_v30 = vmul.f32 %v2320_v14, %v2320_v14 }
 0x105   : > { %1223 = vadd.xlane.f32.xlu1 %v1222_v11  ;;  %v1234_v40 = vsel %vm478_vm2, %v1212_v36, 0.0 }
 0x106   : > { %682 = vadd.xlane.f32.xlu0 %v681_v16  ;;  %v1231_v37 = vsel %vm478_vm2, %v1211_v30, 0.0 }
 0x109   : > { %1220 = vadd.xlane.f32.xlu1 %v1219_v17 }
 0x10a   : > { %685 = vadd.xlane.f32.xlu0 %v684_v20 }
 0x10d   : > { %1229 = vadd.xlane.f32.xlu1 %v1228_v21 }
 0x10e   : > { %688 = vadd.xlane.f32.xlu0 %v687_v24 }
 0x111   : > { %1226 = vadd.xlane.f32.xlu1 %v1225_v28 }
 0x112   : > { %691 = vadd.xlane.f32.xlu0 %v690_v33 }
 0x115   : > { %1232 = vadd.xlane.f32.xlu1 %v1231_v37 }
 0x116   : > { %694 = vadd.xlane.f32.xlu0 %v693_v39 }
 0x119   : > { %1235 = vadd.xlane.f32.xlu1 %v1234_v40 }
 0x177   : > { %v481_v42 = vpop.xlane.xlu0 %480 }
 0x178   : > { %v503_v43 = vadd.f32 1e-06, %v481_v42 }
 0x17a   : > { %v490_v46 = vpop.xlane.xlu1 %489  ;;  %1969 = vrsqrt.f32 %v503_v43 }
 0x17b   : > { %v506_v47 = vadd.f32 1e-06, %v490_v46  ;;  %v484_v50 = vpop.xlane.xlu0 %483 }
 0x17c   : > { %v504_v51 = vadd.f32 1e-06, %v484_v50 }
 0x17e   : > { %1971 = vrsqrt.f32 %v504_v51  ;;  %v487_v54 = vpop.xlane.xlu1 %486 }
 0x17f   : > { %1973 = vrsqrt.f32 %v506_v47  ;;  %v505_v56 = vadd.f32 1e-06, %v487_v54  ;;  %v674_v57 = vpop.xlane.xlu0 %673 }
 0x180   : > { %v696_v59 = vadd.f32 1e-06, %v674_v57 }
 0x181   : > { %1975 = vrsqrt.f32 %v505_v56 }
 0x182   : > { %1977 = vrsqrt.f32 %v696_v59  ;;  %v496_v60 = vpop.xlane.xlu1 %495 }
 0x183   : > { %v508_v62 = vadd.f32 1e-06, %v496_v60  ;;  %v493_v63 = vpop.xlane.xlu0 %492 }
 0x184   : > { %v507_v0 = vadd.f32 1e-06, %v493_v63  ;;  %v1970_v2 = vpop.eup %1969 }
 0x185   : > { %1979 = vrsqrt.f32 %v508_v62  ;;  %v519_v11 = vmul.f32 %v1970_v2, %v2230_v26 }
 0x186   : > { %1981 = vrsqrt.f32 %v507_v0  ;;  %v502_v4 = vpop.xlane.xlu1 %501 }
 0x187   : > { %v677_v5 = vpop.xlane.xlu0 %676  ;;  %v510_v9 = vadd.f32 1e-06, %v502_v4 }
 0x188   : > { %v1972_v6 = vpop.eup %1971 }
 0x189   : > { %v1974_v10 = vpop.eup %1973  ;;  %v520_v12 = vmul.f32 %v1972_v6, %v2228_v25  ;;  %1983 = vrsqrt.f32 %v510_v9 }
 0x18a   : > { %v1218_v15 = vpop.xlane.xlu1 %1217  ;;  %v522_v23 = vmul.f32 %v1974_v10, %v2240_v31 }
 0x18b   : > { %v1976_v17 = vpop.eup %1975  ;;  %v499_v18 = vpop.xlane.xlu0 %498  ;;  %v1905_v19 = vpack.c.bf16 %v520_v12, %v519_v11  ;;  %v1238_v43 = vadd.f32 1e-06, %v1218_v15 }
 0x18c   : > { %v1978_v20 = vpop.eup %1977  ;;  %v509_v21 = vadd.f32 1e-06, %v499_v18  ;;  %v521_v22 = vmul.f32 %v1976_v17, %v2245_v34 }
 0x18d   : > { %1907 = vmatprep.subr.msk.bf16.mxu0 %vm2352_vm3, %v1905_v19  ;;  %1931 = vmatprep.subr.msk.bf16.mxu1 %vm2352_vm3, %v1905_v19  ;;  %v712_v25 = vmul.f32 %v1978_v20, %v2236_v29 }
 0x18e   : > { %1985 = vrsqrt.f32 %v509_v21  ;;  %1910 = vmatpush3.bf16.xpose.msk.msra.mxu0 %vm2352_vm3, %v1905_v19  ;;  %1934 = vmatpush3.bf16.xpose.msk.msra.mxu1 %vm2352_vm3, %v1905_v19  ;;  %v1215_v26 = vpop.xlane.xlu1 %1214  ;;  %v1911_v24 = vpack.c.bf16 %v522_v23, %v521_v22 }
 0x18f   : > { %v1980_v34 = vpop.eup %1979  ;;  %v1237_v28 = vadd.f32 1e-06, %v1215_v26  ;;  %1851 = vmatprep.mubr.msk.f32.mxu0 %vm478_vm2, %v712_v25  ;;  %v680_v31 = vpop.xlane.xlu0 %679 }
 0x190   : > { %v1982_v30 = vpop.eup %1981  ;;  %1913 = vmatprep.subr.msk.bf16.mxu0 %vm2352_vm3, %v1911_v24  ;;  %1937 = vmatprep.subr.msk.bf16.mxu1 %vm2352_vm3, %v1911_v24  ;;  %v524_v29 = vmul.f32 %v1980_v34, %v2257_v41  ;;  %v698_v50 = vadd.f32 1e-06, %v680_v31 }
 0x191   : > { %1987 = vrsqrt.f32 %v1237_v28  ;;  %v523_v32 = vmul.f32 %v1982_v30, %v2262_v44  ;;  %v697_v44 = vadd.f32 1e-06, %v677_v5 }
 0x192   : > { %v1224_v33 = vpop.xlane.xlu1 %1223 }
 0x193   : > { %v683_v36 = vpop.xlane.xlu0 %682  ;;  %v1917_v37 = vpack.c.bf16 %v524_v29, %v523_v32  ;;  %v1984_v39 = vpop.eup %1983  ;;  %1989 = vrsqrt.f32 %v697_v44  ;;  %v1240_v60 = vadd.f32 1e-06, %v1224_v33 }
 0x194   : > { %v526_v47 = vmul.f32 %v1984_v39, %v2271_v49  ;;  %1991 = vrsqrt.f32 %v1238_v43  ;;  %v699_v63 = vadd.f32 1e-06, %v683_v36 }
 0x195   : > { %1993 = vrsqrt.f32 %v698_v50 }
 0x196   : > { %1916 = vmatpush3.bf16.xpose.msk.msra.mxu0 %vm2352_vm3, %v1911_v24  ;;  %1940 = vmatpush3.bf16.xpose.msk.msra.mxu1 %vm2352_vm3, %v1911_v24  ;;  %v1221_v40 = vpop.xlane.xlu1 %1220 }
 0x197   : > { %1919 = vmatprep.subr.msk.bf16.mxu0 %vm2352_vm3, %v1917_v37  ;;  %1943 = vmatprep.subr.msk.bf16.mxu1 %vm2352_vm3, %v1917_v37  ;;  %v686_v41 = vpop.xlane.xlu0 %685  ;;  %v1239_v56 = vadd.f32 1e-06, %v1221_v40 }
 0x198   : > { %v1986_v42 = vpop.eup %1985  ;;  %v700_v0 = vadd.f32 1e-06, %v686_v41 }
 0x199   : > { %v525_v46 = vmul.f32 %v1986_v42, %v2278_v53  ;;  %1995 = vrsqrt.f32 %v1239_v56 }
 0x19a   : > { %v1230_v51 = vpop.xlane.xlu1 %1229  ;;  %1997 = vrsqrt.f32 %v1240_v60 }
 0x19b   : > { %v1988_v54 = vpop.eup %1987  ;;  %v689_v57 = vpop.xlane.xlu0 %688  ;;  %v1923_v59 = vpack.c.bf16 %v526_v47, %v525_v46  ;;  %1999 = vrsqrt.f32 %v699_v63 }
 0x19c   : > { %v1253_v62 = vmul.f32 %v1988_v54, %v2292_v61  ;;  %v1242_v61 = vadd.f32 1e-06, %v1230_v51  ;;  %v701_v4 = vadd.f32 1e-06, %v689_v57  ;;  %2001 = vrsqrt.f32 %v700_v0 }
 0x19d   : > { %v1990_v12 = vpop.eup %1989 }
 0x19e   : > { %1922 = vmatpush3.bf16.xpose.msk.msra.mxu0 %vm2352_vm3, %v1917_v37  ;;  %1946 = vmatpush3.bf16.xpose.msk.msra.mxu1 %vm2352_vm3, %v1917_v37  ;;  %v1227_v49 = vpop.xlane.xlu1 %1226  ;;  %v1992_v17 = vpop.eup %1991  ;;  %v713_v23 = vmul.f32 %v1990_v12, %v2232_v27 }
 0x19f   : > { %1893 = vmatprep.mubr.msk.f32.mxu1 %vm478_vm2, %v1253_v62  ;;  %v1241_v53 = vadd.f32 1e-06, %v1227_v49  ;;  %1925 = vmatprep.subr.msk.bf16.mxu0 %vm2352_vm3, %v1923_v59  ;;  %v692_v2 = vpop.xlane.xlu0 %691  ;;  %v1994_v19 = vpop.eup %1993  ;;  %v1254_v25 = vmul.f32 %v1992_v17, %v2286_v58 }
 0x1a0   : > { %1949 = vmatprep.subr.msk.bf16.mxu1 %vm2352_vm3, %v1923_v59  ;;  %v702_v5 = vadd.f32 1e-06, %v692_v2  ;;  %v714_v24 = vmul.f32 %v1994_v19, %v2253_v38 }
 0x1a1   : > { %2003 = vrsqrt.f32 %v1241_v53 }
 0x1a2   : > { %v1233_v6 = vpop.xlane.xlu1 %1232  ;;  %2005 = vrsqrt.f32 %v1242_v61 }
 0x1a3   : > { %v1243_v9 = vadd.f32 1e-06, %v1233_v6  ;;  %v695_v10 = vpop.xlane.xlu0 %694  ;;  %2007 = vrsqrt.f32 %v701_v4  ;;  %v1996_v20 = vpop.eup %1995 }
 0x1a4   : > { %v703_v11 = vadd.f32 1e-06, %v695_v10  ;;  %2009 = vrsqrt.f32 %v702_v5  ;;  %v1998_v21 = vpop.eup %1997  ;;  %v1255_v16 = vmul.f32 %v1996_v20, %v2301_v3 }
 0x1a5   : > { %2011 = vrsqrt.f32 %v1243_v9  ;;  %v2000_v22 = vpop.eup %1999  ;;  %v1256_v58 = vmul.f32 %v1998_v21, %v2298_v1 }
 0x1a6   : > { %1928 = vmatpush3.bf16.xpose.msk.msra.mxu0 %vm2352_vm3, %v1923_v59  ;;  %1952 = vmatpush3.bf16.xpose.msk.msra.mxu1 %vm2352_vm3, %v1923_v59  ;;  %v1236_v15 = vpop.xlane.xlu1 %1235  ;;  %2013 = vrsqrt.f32 %v703_v11  ;;  %v2002_v26 = vpop.eup %2001  ;;  %v715_v27 = vmul.f32 %v2000_v22, %v2247_v35 }
 0x1a7   : > { %v1244_v18 = vadd.f32 1e-06, %v1236_v15  ;;  %v716_v38 = vmul.f32 %v2002_v26, %v2269_v48 }
 0x1a9   : > { %2015 = vrsqrt.f32 %v1244_v18 }
 0x1ab   : > { %v2004_v34 = vpop.eup %2003 }
 0x1ac   : > { %v2006_v28 = vpop.eup %2005  ;;  %v1257_v3 = vmul.f32 %v2004_v34, %v2310_v8 }
 0x1ad   : > { %1852 = vmatmul.mubr.msk.f32.vlgmr.msra.gmra.mrb[8].mxu0 %vm478_vm2, %v713_v23  ;;  %1894 = vmatmul.mubr.msk.f32.vlgmr.msra.gmra.mrb[16].mxu1 %vm478_vm2, %v1254_v25  ;;  %v2008_v31 = vpop.eup %2007  ;;  %v1258_v35 = vmul.f32 %v2006_v28, %v2308_v7 }
 0x1ae   : > { %1854 = vmatprep.mubr.msk.f32.mxu0 %vm478_vm2, %v714_v24  ;;  %1896 = vmatprep.mubr.msk.f32.mxu1 %vm478_vm2, %v1255_v16  ;;  %v2010_v30 = vpop.eup %2009  ;;  %v717_v33 = vmul.f32 %v2008_v31, %v2264_v45 }
 0x1af   : > { %v2012_v29 = vpop.eup %2011  ;;  %v718_v36 = vmul.f32 %v2010_v30, %v2281_v55 }
 0x1b0   : > { %v2014_v32 = vpop.eup %2013  ;;  %v1259_v48 = vmul.f32 %v2012_v29, %v2320_v14 }
 0x1b1   : > { %1855 = vmatmul.mubr.msk.f32.gmra.mrb[10].mxu0 %vm478_vm2, %v715_v27  ;;  %1897 = vmatmul.mubr.msk.f32.gmra.mrb[18].mxu1 %vm478_vm2, %v1256_v58  ;;  %v719_v8 = vmul.f32 %v2014_v32, %v2276_v52 }
 0x1b2   : > { %1857 = vmatprep.mubr.msk.f32.mxu0 %vm478_vm2, %v716_v38  ;;  %1899 = vmatprep.mubr.msk.f32.mxu1 %vm478_vm2, %v1257_v3 }
 0x1b3   : > { %v2016_v1 = vpop.eup %2015 }
 0x1b4   : > { %v1260_v37 = vmul.f32 %v2016_v1, %v2318_v13 }
 0x1b5   : > { %1858 = vmatmul.mubr.msk.f32.gmra.mrb[12].mxu0 %vm478_vm2, %v717_v33  ;;  %1900 = vmatmul.mubr.msk.f32.gmra.mrb[20].mxu1 %vm478_vm2, %v1258_v35 }
 0x1b6   : > { %1860 = vmatprep.mubr.msk.f32.mxu0 %vm478_vm2, %v718_v36  ;;  %1902 = vmatprep.mubr.msk.f32.mxu1 %vm478_vm2, %v1259_v48 }
 0x1b9   : > { %1861 = vmatmul.mubr.msk.f32.gmra.mrb[14].mxu0 %vm478_vm2, %v719_v8  ;;  %1903 = vmatmul.mubr.msk.f32.gmra.mrb[22].mxu1 %vm478_vm2, %v1260_v37 }
 0x280   : > { %v2426_v45 = vpop.f32.mrb[8].mxu0  ;;  %v2428_v55 = vpop.f32.mrb[16].mxu1 }
 0x281   : > { %v2430_v7 = vpop.f32.mrb[9].mxu0  ;;  %v2432_v14 = vpop.f32.mrb[17].mxu1  ;;  %v875_v39 = vsel %vm873_vm4, %v2426_v45, -inf  ;;  %v1391_v44 = vsel %vm873_vm4, %v2428_v55, -inf }
 0x282   : > { %943 = vmax.xlane.f32.xlu1 %v875_v39  ;;  %v874_v52 = vsel %vm873_vm4, %v2430_v7, -inf  ;;  %v1390_v43 = vsel %vm873_vm4, %v2432_v14, -inf }
 0x283   : > { %941 = vmax.xlane.f32.xlu0 %v874_v52 }
 0x284   : > { %v2438_v13 = vpop.f32.mrb[10].mxu0  ;;  %v2440_v40 = vpop.f32.mrb[18].mxu1 }
 0x285   : > { %v2442_v41 = vpop.f32.mrb[11].mxu0  ;;  %v2444_v42 = vpop.f32.mrb[19].mxu1  ;;  %v1393_v57 = vsel %vm873_vm4, %v2440_v40, -inf  ;;  %v877_v59 = vsel %vm873_vm4, %v2438_v13, -inf }
 0x286   : > { %1459 = vmax.xlane.f32.xlu1 %v1391_v44  ;;  %v876_v2 = vsel %vm873_vm4, %v2442_v41, -inf  ;;  %v1392_v61 = vsel %vm873_vm4, %v2444_v42, -inf }
 0x287   : > { %1457 = vmax.xlane.f32.xlu0 %v1390_v43 }
 0x288   : > { %v2450_v46 = vpop.f32.mrb[12].mxu0  ;;  %v2452_v47 = vpop.f32.mrb[20].mxu1 }
 0x289   : > { %v880_v50 = vsel %vm873_vm4, %v2450_v46, -inf  ;;  %v1396_v51 = vsel %vm873_vm4, %v2452_v47, -inf  ;;  %v2458_v54 = vpop.f32.mrb[13].mxu0  ;;  %v2460_v56 = vpop.f32.mrb[21].mxu1 }
 0x28a   : > { %v881_v60 = vmax.f32 %v875_v39, %v880_v50  ;;  %v1397_v62 = vmax.f32 %v1391_v44, %v1396_v51  ;;  %v878_v63 = vsel %vm873_vm4, %v2458_v54, -inf  ;;  %v1394_v0 = vsel %vm873_vm4, %v2460_v56, -inf  ;;  %1463 = vmax.xlane.f32.xlu1 %v1393_v57 }
 0x28b   : > { %v879_v49 = vmax.f32 %v874_v52, %v878_v63  ;;  %v1395_v53 = vmax.f32 %v1390_v43, %v1394_v0  ;;  %947 = vmax.xlane.f32.xlu0 %v877_v59 }
 0x28c   : > { %v2474_v4 = vpop.f32.mrb[14].mxu0  ;;  %v2476_v5 = vpop.f32.mrb[22].mxu1 }
 0x28d   : > { %v886_v6 = vmax.f32 %v879_v49, %v881_v60  ;;  %v1402_v9 = vmax.f32 %v1395_v53, %v1397_v62  ;;  %v884_v10 = vsel %vm873_vm4, %v2474_v4, -inf  ;;  %v1400_v11 = vsel %vm873_vm4, %v2476_v5, -inf  ;;  %v864_v12 = vpop.f32.mrb[15].mxu0  ;;  %v2482_v15 = vpop.f32.mrb[23].mxu1 }
 0x28e   : > { %v885_v17 = vmax.f32 %v877_v59, %v884_v10  ;;  %v1401_v18 = vmax.f32 %v1393_v57, %v1400_v11  ;;  %v882_v19 = vsel %vm873_vm4, %v864_v12, -inf  ;;  %v1398_v20 = vsel %vm873_vm4, %v2482_v15, -inf  ;;  %1461 = vmax.xlane.f32.xlu1 %v1392_v61 }
 0x28f   : > { %v883_v21 = vmax.f32 %v876_v2, %v882_v19  ;;  %v1399_v22 = vmax.f32 %v1392_v61, %v1398_v20  ;;  %945 = vmax.xlane.f32.xlu0 %v876_v2 }
 0x291   : > { %v887_v23 = vmax.f32 %v883_v21, %v885_v17  ;;  %v1403_v25 = vmax.f32 %v1399_v22, %v1401_v18 }
 0x292   : > { %1467 = vmax.xlane.f32.xlu1 %v1396_v51 }
 0x293   : > { %v888_v26 = vmax.f32 %v886_v6, %v887_v23  ;;  %v1404_v24 = vmax.f32 %v1402_v9, %v1403_v25  ;;  %951 = vmax.xlane.f32.xlu0 %v880_v50 }
 0x295   : > { %v889_v16 = vrot.slane %v888_v26, 4  ;;  %v1405_v34 = vrot.slane %v1404_v24, 4 }
 0x296   : > { %1465 = vmax.xlane.f32.xlu1 %v1394_v0 }
 0x297   : > { %v890_v28 = vmax.f32 %v888_v26, %v889_v16  ;;  %v1406_v31 = vmax.f32 %v1404_v24, %v1405_v34  ;;  %949 = vmax.xlane.f32.xlu0 %v878_v63 }
 0x299   : > { %v891_v27 = vrot.slane %v890_v28, 2  ;;  %v1407_v58 = vrot.slane %v1406_v31, 2 }
 0x29a   : > { %1471 = vmax.xlane.f32.xlu1 %v1400_v11 }
 0x29b   : > { %v892_v30 = vmax.f32 %v890_v28, %v891_v27  ;;  %v1408_v38 = vmax.f32 %v1406_v31, %v1407_v58  ;;  %955 = vmax.xlane.f32.xlu0 %v884_v10 }
 0x29d   : > { %v893_v3 = vrot.slane %v892_v30, 1  ;;  %v1409_v29 = vrot.slane %v1408_v38, 1 }
 0x29e   : > { %1469 = vmax.xlane.f32.xlu1 %v1398_v20 }
 0x29f   : > { %v894_v32 = vmax.f32 %v892_v30, %v893_v3  ;;  %v1410_v33 = vmax.f32 %v1408_v38, %v1409_v29  ;;  %953 = vmax.xlane.f32.xlu0 %v882_v19 }
 0x2a1   : > { %v895_v35 = vsub.f32 %v2430_v7, %v894_v32  ;;  %v896_v1 = vsub.f32 %v2426_v45, %v894_v32  ;;  %v897_v36 = vsub.f32 %v2442_v41, %v894_v32  ;;  %v898_v48 = vsub.f32 %v2438_v13, %v894_v32 }
 0x2a2   : > { %v899_v8 = vsub.f32 %v2458_v54, %v894_v32  ;;  %v900_v37 = vsub.f32 %v2450_v46, %v894_v32  ;;  %v901_v39 = vsub.f32 %v864_v12, %v894_v32  ;;  %v981_v52 = vmul.f32 1.442695, %v894_v32 }
 0x2a3   : > { %v903_v44 = vmul.f32 1.442695, %v895_v35  ;;  %v905_v43 = vmul.f32 1.442695, %v896_v1  ;;  %v907_v50 = vmul.f32 1.442695, %v897_v36  ;;  %v1411_v51 = vsub.f32 %v2432_v14, %v1410_v33 }
 0x2a4   : > { %v909_v57 = vmul.f32 1.442695, %v898_v48  ;;  %v911_v59 = vmul.f32 1.442695, %v899_v8  ;;  %2017 = vpow2.f32 %v981_v52  ;;  %v913_v45 = vmul.f32 1.442695, %v900_v37 }
 0x2a5   : > { %2019 = vpow2.f32 %v903_v44  ;;  %v1412_v7 = vsub.f32 %v2428_v55, %v1410_v33  ;;  %v1413_v13 = vsub.f32 %v2444_v42, %v1410_v33  ;;  %v1414_v41 = vsub.f32 %v2440_v40, %v1410_v33 }
 0x2a6   : > { %2021 = vpow2.f32 %v905_v43  ;;  %v1415_v46 = vsub.f32 %v2460_v56, %v1410_v33  ;;  %v1416_v54 = vsub.f32 %v2452_v47, %v1410_v33  ;;  %v915_v60 = vmul.f32 1.442695, %v901_v39 }
 0x2a7   : > { %2023 = vpow2.f32 %v907_v50  ;;  %v1417_v14 = vsub.f32 %v2482_v15, %v1410_v33  ;;  %v1419_v62 = vmul.f32 1.442695, %v1411_v51  ;;  %v1421_v63 = vmul.f32 1.442695, %v1412_v7 }
 0x2a8   : > { %2025 = vpow2.f32 %v909_v57  ;;  %v1423_v0 = vmul.f32 1.442695, %v1413_v13  ;;  %v1418_v55 = vsub.f32 %v2476_v5, %v1410_v33  ;;  %v902_v42 = vsub.f32 %v2474_v4, %v894_v32 }
 0x2a9   : > { %2027 = vpow2.f32 %v911_v59  ;;  %v1425_v40 = vmul.f32 1.442695, %v1414_v41  ;;  %v1427_v56 = vmul.f32 1.442695, %v1415_v46  ;;  %v1429_v47 = vmul.f32 1.442695, %v1416_v54 }
 0x2aa   : > { %2029 = vpow2.f32 %v913_v45  ;;  %v1431_v53 = vmul.f32 1.442695, %v1417_v14  ;;  %v1497_v61 = vmul.f32 1.442695, %v1410_v33  ;;  %v1433_v12 = vmul.f32 1.442695, %v1418_v55 }
 0x2ab   : > { %2031 = vpow2.f32 %v915_v60  ;;  %v917_v19 = vmul.f32 1.442695, %v902_v42 }
 0x2ac   : > { %2033 = vpow2.f32 %v1419_v62 }
 0x2ad   : > { %2035 = vpow2.f32 %v1421_v63 }
 0x2ae   : > { %v2502_v49 = vpop.eup %2017  ;;  %2037 = vpow2.f32 %v1423_v0 }
 0x2af   : > { %v2020_v2 = vpop.eup %2019  ;;  %2039 = vpow2.f32 %v1425_v40 }
 0x2b0   : > { %v2022_v6 = vpop.eup %2021  ;;  %v919_v9 = vsel %vm873_vm4, %v2020_v2, 0.0  ;;  %2041 = vpow2.f32 %v1427_v56  ;;  %v983_v5 = vmul.f32 %v2020_v2, %v2502_v49 }
 0x2b1   : > { %v2024_v4 = vpop.eup %2023  ;;  %v920_v10 = vsel %vm873_vm4, %v2022_v6, 0.0  ;;  %2043 = vpow2.f32 %v1429_v47  ;;  %v984_v11 = vmul.f32 %v2022_v6, %v2502_v49 }
 0x2b2   : > { %v2026_v15 = vpop.eup %2025  ;;  %v921_v17 = vadd.f32 %v920_v10, %v919_v9  ;;  %2045 = vpow2.f32 %v1431_v53  ;;  %v991_v18 = vsel %vm873_vm4, %v983_v5, 0.0  ;;  %v922_v21 = vsel %vm873_vm4, %v2024_v4, 0.0 }
 0x2b3   : > { %v2028_v20 = vpop.eup %2027  ;;  %2047 = vpow2.f32 %v1497_v61  ;;  %v994_v22 = vsel %vm873_vm4, %v984_v11, 0.0  ;;  %992 = vadd.xlane.f32.xlu0 %v991_v18  ;;  %v985_v23 = vmul.f32 %v2024_v4, %v2502_v49  ;;  %v2513_v24 = vmul.f32 %v2026_v15, %v2502_v49 }
 0x2b4   : > { %v2030_v25 = vpop.eup %2029  ;;  %v923_v26 = vadd.f32 %v922_v21, %v921_v17  ;;  %995 = vadd.xlane.f32.xlu1 %v994_v22  ;;  %v2516_v16 = vmul.f32 %v2028_v20, %v2502_v49  ;;  %v924_v28 = vsel %vm873_vm4, %v2026_v15, 0.0  ;;  %2049 = vpow2.f32 %v1433_v12 }
 0x2b5   : > { %v2032_v34 = vpop.eup %2031  ;;  %v2520_v31 = vmul.f32 %v2030_v25, %v2502_v49  ;;  %v926_v38 = vsel %vm873_vm4, %v2028_v20, 0.0  ;;  %2051 = vpow2.f32 %v917_v19  ;;  %v928_v36 = vsel %vm873_vm4, %v2030_v25, 0.0 }
 0x2b6   : > { %v2034_v27 = vpop.eup %2033  ;;  %v925_v58 = vadd.f32 %v924_v28, %v923_v26  ;;  %v2525_v29 = vmul.f32 %v2032_v34, %v2502_v49  ;;  %v930_v44 = vsel %vm873_vm4, %v2032_v34, 0.0  ;;  %v997_v10 = vsel %vm873_vm4, %v985_v23, 0.0 }
 0x2b7   : > { %v2036_v30 = vpop.eup %2035  ;;  %v1435_v3 = vsel %vm873_vm4, %v2034_v27, 0.0  ;;  %v1003_v26 = vsel %vm873_vm4, %v2516_v16, 0.0 }
 0x2b8   : > { %v2038_v32 = vpop.eup %2037  ;;  %v927_v33 = vadd.f32 %v926_v38, %v925_v58  ;;  %v1436_v35 = vsel %vm873_vm4, %v2036_v30, 0.0  ;;  %v1009_v16 = vsel %vm873_vm4, %v2525_v29, 0.0 }
 0x2b9   : > { %v2040_v1 = vpop.eup %2039  ;;  %v1437_v48 = vadd.f32 %v1436_v35, %v1435_v3  ;;  %v1438_v39 = vsel %vm873_vm4, %v2038_v32, 0.0 }
 0x2ba   : > { %v2042_v8 = vpop.eup %2041  ;;  %v929_v37 = vadd.f32 %v928_v36, %v927_v33  ;;  %v1440_v57 = vsel %vm873_vm4, %v2040_v1, 0.0 }
 0x2bb   : > { %v2044_v52 = vpop.eup %2043  ;;  %v1439_v43 = vadd.f32 %v1438_v39, %v1437_v48  ;;  %v1442_v7 = vsel %vm873_vm4, %v2042_v8, 0.0 }
 0x2bc   : > { %v2046_v50 = vpop.eup %2045  ;;  %v931_v51 = vadd.f32 %v930_v44, %v929_v37  ;;  %v1444_v55 = vsel %vm873_vm4, %v2044_v52, 0.0 }
 0x2bd   : > { %v2048_v59 = vpop.eup %2047  ;;  %v1441_v45 = vadd.f32 %v1440_v57, %v1439_v43  ;;  %v1446_v53 = vsel %vm873_vm4, %v2046_v50, 0.0 }
 0x2be   : > { %v1500_v13 = vmul.f32 %v2048_v59, %v2036_v30  ;;  %v1499_v41 = vmul.f32 %v2048_v59, %v2034_v27  ;;  %v1501_v46 = vmul.f32 %v2048_v59, %v2038_v32  ;;  %v1502_v54 = vmul.f32 %v2048_v59, %v2040_v1  ;;  %v2050_v60 = vpop.eup %2049 }
 0x2bf   : > { %v1443_v14 = vadd.f32 %v1442_v7, %v1441_v45  ;;  %v1503_v62 = vmul.f32 %v2048_v59, %v2042_v8  ;;  %v1504_v63 = vmul.f32 %v2048_v59, %v2044_v52  ;;  %v1505_v0 = vmul.f32 %v2048_v59, %v2046_v50  ;;  %v2052_v56 = vpop.eup %2051 }
 0x2c0   : > { %v1510_v42 = vsel %vm873_vm4, %v1500_v13, 0.0  ;;  %v1507_v40 = vsel %vm873_vm4, %v1499_v41, 0.0  ;;  %v1506_v2 = vmul.f32 %v2050_v60, %v2048_v59  ;;  %v990_v61 = vmul.f32 %v2052_v56, %v2502_v49 }
 0x2c1   : > { %v1445_v47 = vadd.f32 %v1444_v55, %v1443_v14  ;;  %1511 = vadd.xlane.f32.xlu1 %v1510_v42  ;;  %1508 = vadd.xlane.f32.xlu0 %v1507_v40  ;;  %v932_v6 = vsel %vm873_vm4, %v2052_v56, 0.0  ;;  %v1513_v4 = vsel %vm873_vm4, %v1501_v46, 0.0  ;;  %v1448_v11 = vsel %vm873_vm4, %v2050_v60, 0.0 }
 0x2c2   : > { %v933_v5 = vadd.f32 %v932_v6, %v931_v51  ;;  %v1516_v19 = vsel %vm873_vm4, %v1502_v54, 0.0  ;;  %v1000_v49 = vsel %vm873_vm4, %v2513_v24, 0.0  ;;  %v1519_v23 = vsel %vm873_vm4, %v1503_v62, 0.0 }
 0x2c3   : > { %v1447_v9 = vadd.f32 %v1446_v53, %v1445_v47  ;;  %v1522_v30 = vsel %vm873_vm4, %v1504_v63, 0.0  ;;  %v1006_v24 = vsel %vm873_vm4, %v2520_v31, 0.0  ;;  %v1525_v3 = vsel %vm873_vm4, %v1505_v0, 0.0 }
 0x2c4   : > { %v934_v12 = vrot.slane %v933_v5, 4  ;;  %v1528_v32 = vsel %vm873_vm4, %v1506_v2, 0.0  ;;  %v1012_v33 = vsel %vm873_vm4, %v990_v61, 0.0 }
 0x2c5   : > { %1514 = vadd.xlane.f32.xlu1 %v1513_v4  ;;  %998 = vadd.xlane.f32.xlu0 %v997_v10  ;;  %v1449_v15 = vadd.f32 %v1448_v11, %v1447_v9 }
 0x2c6   : > { %v935_v17 = vadd.f32 %v934_v12, %v933_v5 }
 0x2c7   : > { %v1450_v18 = vrot.slane %v1449_v15, 4 }
 0x2c8   : > { %v936_v20 = vrot.slane %v935_v17, 2 }
 0x2c9   : > { %1517 = vadd.xlane.f32.xlu1 %v1516_v19  ;;  %1001 = vadd.xlane.f32.xlu0 %v1000_v49  ;;  %v1451_v21 = vadd.f32 %v1450_v18, %v1449_v15 }
 0x2ca   : > { %v937_v22 = vadd.f32 %v936_v20, %v935_v17 }
 0x2cb   : > { %v1452_v25 = vrot.slane %v1451_v21, 2 }
 0x2cc   : > { %v938_v34 = vrot.slane %v937_v22, 1 }
 0x2cd   : > { %1520 = vadd.xlane.f32.xlu1 %v1519_v23  ;;  %1004 = vadd.xlane.f32.xlu0 %v1003_v26  ;;  %v1453_v28 = vadd.f32 %v1452_v25, %v1451_v21 }
 0x2ce   : > { %v939_v27 = vadd.f32 %v938_v34, %v937_v22 }
 0x2cf   : > { %v1454_v58 = vrot.slane %v1453_v28, 1 }
 0x2d0   : > { %2053 = vrcp.f32 %v939_v27 }
 0x2d1   : > { %1523 = vadd.xlane.f32.xlu1 %v1522_v30  ;;  %1007 = vadd.xlane.f32.xlu0 %v1006_v24  ;;  %v1455_v38 = vadd.f32 %v1454_v58, %v1453_v28 }
 0x2d3   : > { %2055 = vrcp.f32 %v1455_v38 }
 0x2d5   : > { %1526 = vadd.xlane.f32.xlu1 %v1525_v3  ;;  %1010 = vadd.xlane.f32.xlu0 %v1009_v16 }
 0x2d9   : > { %1529 = vadd.xlane.f32.xlu1 %v1528_v32  ;;  %1013 = vadd.xlane.f32.xlu0 %v1012_v33 }
 0x2da   : > { %v2054_v31 = vpop.eup %2053 }
 0x2db   : > { %v1057_v35 = vsel %vm1056_vm5, %v2054_v31, 0.0 }
 0x2dd   : > { %v2056_v1 = vpop.eup %2055  ;;  %1058 = vadd.xlane.f32.xlu1 %v1057_v35 }
 0x2de   : > { %v1571_v36 = vsel %vm1056_vm5, %v2056_v1, 0.0 }
 0x2e1   : > { %1572 = vadd.xlane.f32.xlu1 %v1571_v36 }
 0x30f   : > { %v944_v48 = vpop.xlane.xlu1 %943 }
 0x310   : > { %v942_v8 = vpop.xlane.xlu0 %941  ;;  %v958_v13 = vsub.f32 0.0, %v944_v48 }
 0x311   : > { %v957_v41 = vsub.f32 0.0, %v942_v8 }
 0x312   : > { %v967_v62 = vmul.f32 1.442695, %v958_v13 }
 0x313   : > { %v1460_v37 = vpop.xlane.xlu1 %1459  ;;  %v965_v0 = vmul.f32 1.442695, %v957_v41 }
 0x314   : > { %v1458_v39 = vpop.xlane.xlu0 %1457  ;;  %v1474_v46 = vsub.f32 0.0, %v1460_v37  ;;  %2057 = vpow2.f32 %v967_v62 }
 0x315   : > { %v1473_v54 = vsub.f32 0.0, %v1458_v39  ;;  %2059 = vpow2.f32 %v965_v0 }
 0x316   : > { %v1483_v42 = vmul.f32 1.442695, %v1474_v46 }
 0x317   : > { %v1464_v29 = vpop.xlane.xlu1 %1463  ;;  %v1481_v56 = vmul.f32 1.442695, %v1473_v54 }
 0x318   : > { %v948_v52 = vpop.xlane.xlu0 %947  ;;  %v1476_v55 = vsub.f32 0.0, %v1464_v29  ;;  %2061 = vpow2.f32 %v1483_v42 }
 0x319   : > { %v960_v40 = vsub.f32 0.0, %v948_v52  ;;  %2063 = vpow2.f32 %v1481_v56 }
 0x31a   : > { %v1487_v9 = vmul.f32 1.442695, %v1476_v55 }
 0x31b   : > { %v1462_v44 = vpop.xlane.xlu1 %1461  ;;  %v971_v4 = vmul.f32 1.442695, %v960_v40 }
 0x31c   : > { %v946_v43 = vpop.xlane.xlu0 %945  ;;  %v1475_v47 = vsub.f32 0.0, %v1462_v44 }
 0x31d   : > { %v959_v63 = vsub.f32 0.0, %v946_v43 }
 0x31e   : > { %v1485_v11 = vmul.f32 1.442695, %v1475_v47  ;;  %v2058_v58 = vpop.eup %2057 }
 0x31f   : > { %v1468_v50 = vpop.xlane.xlu1 %1467  ;;  %v969_v61 = vmul.f32 1.442695, %v959_v63  ;;  %v2060_v24 = vpop.eup %2059 }
 0x320   : > { %v952_v51 = vpop.xlane.xlu0 %951  ;;  %v1478_v5 = vsub.f32 0.0, %v1468_v50 }
 0x321   : > { %v962_v10 = vsub.f32 0.0, %v952_v51  ;;  %2065 = vpow2.f32 %v969_v61 }
 0x322   : > { %2067 = vpow2.f32 %v1487_v9  ;;  %v1491_v18 = vmul.f32 1.442695, %v1478_v5  ;;  %v2062_v3 = vpop.eup %2061 }
 0x323   : > { %v1466_v57 = vpop.xlane.xlu1 %1465  ;;  %2069 = vpow2.f32 %v971_v4  ;;  %v975_v21 = vmul.f32 1.442695, %v962_v10  ;;  %v2064_v32 = vpop.eup %2063 }
 0x324   : > { %v950_v59 = vpop.xlane.xlu0 %949  ;;  %v1477_v12 = vsub.f32 0.0, %v1466_v57  ;;  %2071 = vpow2.f32 %v1485_v11 }
 0x325   : > { %v961_v6 = vsub.f32 0.0, %v950_v59 }
 0x326   : > { %v1489_v25 = vmul.f32 1.442695, %v1477_v12 }
 0x327   : > { %v1472_v45 = vpop.xlane.xlu1 %1471  ;;  %v973_v15 = vmul.f32 1.442695, %v961_v6 }
 0x328   : > { %v956_v7 = vpop.xlane.xlu0 %955  ;;  %v1480_v17 = vsub.f32 0.0, %v1472_v45 }
 0x329   : > { %v964_v19 = vsub.f32 0.0, %v956_v7  ;;  %2073 = vpow2.f32 %v973_v15 }
 0x32a   : > { %v1495_v26 = vmul.f32 1.442695, %v1480_v17  ;;  %2075 = vpow2.f32 %v1491_v18 }
 0x32b   : > { %v1470_v60 = vpop.xlane.xlu1 %1469  ;;  %v979_v34 = vmul.f32 1.442695, %v964_v19  ;;  %2077 = vpow2.f32 %v975_v21  ;;  %v2066_v1 = vpop.eup %2065 }
 0x32c   : > { %v954_v14 = vpop.xlane.xlu0 %953  ;;  %v1479_v22 = vsub.f32 0.0, %v1470_v60  ;;  %2079 = vpow2.f32 %v1489_v25  ;;  %v2068_v48 = vpop.eup %2067 }
 0x32d   : > { %v963_v23 = vsub.f32 0.0, %v954_v14  ;;  %2081 = vpow2.f32 %v1495_v26  ;;  %v2070_v37 = vpop.eup %2069 }
 0x32e   : > { %v1493_v30 = vmul.f32 1.442695, %v1479_v22  ;;  %2083 = vpow2.f32 %v979_v34  ;;  %v2072_v29 = vpop.eup %2071 }
 0x32f   : > { %v977_v38 = vmul.f32 1.442695, %v963_v23 }
 0x330   : > { %2085 = vpow2.f32 %v1493_v30 }
 0x331   : > { %2087 = vpow2.f32 %v977_v38 }
 0x333   : > { %v2074_v50 = vpop.eup %2073 }
 0x334   : > { %v2076_v57 = vpop.eup %2075 }
 0x335   : > { %v2078_v45 = vpop.eup %2077 }
 0x336   : > { %v2080_v13 = vpop.eup %2079 }
 0x337   : > { %v2082_v54 = vpop.eup %2081 }
 0x338   : > { %v2084_v14 = vpop.eup %2083 }
 0x33a   : > { %v2086_v63 = vpop.eup %2085 }
 0x33b   : > { %v2088_v55 = vpop.eup %2087 }
 0x340   : > { %v993_v2 = vpop.xlane.xlu0 %992 }
 0x341   : > { %v996_v53 = vpop.xlane.xlu1 %995  ;;  %v1015_v16 = vmul.f32 %v2060_v24, %v993_v2 }
 0x342   : > { %v1016_v33 = vmul.f32 %v2058_v58, %v996_v53 }
 0x343   : > { %2089 = vrcp.f32 %v1015_v16 }
 0x344   : > { %2091 = vrcp.f32 %v1016_v33 }
 0x34d   : > { %v2090_v56 = vpop.eup %2089 }
 0x34e   : > { %v1512_v49 = vpop.xlane.xlu1 %1511  ;;  %v1509_v20 = vpop.xlane.xlu0 %1508  ;;  %v1032_v11 = vsel %vm1031_vm6, %v2090_v56, 0.0 }
 0x34f   : > { %v1532_v36 = vmul.f32 %v2062_v3, %v1512_v49  ;;  %v1531_v39 = vmul.f32 %v2064_v32, %v1509_v20  ;;  %v2092_v53 = vpop.eup %2091 }
 0x350   : > { %v1033_v10 = vsel %vm1031_vm6, %v2092_v53, 0.0 }
 0x351   : > { %2093 = vrcp.f32 %v1532_v36  ;;  %v1034_v20 = vadd.f32 %v1033_v10, %v1032_v11 }
 0x352   : > { %v1515_v28 = vpop.xlane.xlu1 %1514  ;;  %v999_v27 = vpop.xlane.xlu0 %998 }
 0x353   : > { %v1017_v8 = vmul.f32 %v2066_v1, %v999_v27  ;;  %v1533_v51 = vmul.f32 %v2072_v29, %v1515_v28 }
 0x355   : > { %2095 = vrcp.f32 %v1017_v8 }
 0x356   : > { %v1518_v31 = vpop.xlane.xlu1 %1517  ;;  %v1002_v35 = vpop.xlane.xlu0 %1001  ;;  %2097 = vrcp.f32 %v1531_v39 }
 0x357   : > { %v1018_v52 = vmul.f32 %v2070_v37, %v1002_v35  ;;  %v1534_v7 = vmul.f32 %v2068_v48, %v1518_v31 }
 0x359   : > { %2099 = vrcp.f32 %v1018_v52 }
 0x35a   : > { %v1521_v44 = vpop.xlane.xlu1 %1520  ;;  %v1005_v43 = vpop.xlane.xlu0 %1004  ;;  %2101 = vrcp.f32 %v1533_v51 }
 0x35b   : > { %v1019_v59 = vmul.f32 %v2074_v50, %v1005_v43  ;;  %v1535_v62 = vmul.f32 %v2080_v13, %v1521_v44  ;;  %v2094_v61 = vpop.eup %2093 }
 0x35c   : > { %v1548_v22 = vsel %vm1031_vm6, %v2094_v61, 0.0 }
 0x35d   : > { %2103 = vrcp.f32 %v1019_v59 }
 0x35e   : > { %v1524_v41 = vpop.xlane.xlu1 %1523  ;;  %v1008_v46 = vpop.xlane.xlu0 %1007  ;;  %2105 = vrcp.f32 %v1534_v7 }
 0x35f   : > { %v1020_v60 = vmul.f32 %v2078_v45, %v1008_v46  ;;  %v1536_v0 = vmul.f32 %v2076_v57, %v1524_v41  ;;  %v2096_v6 = vpop.eup %2095 }
 0x360   : > { %v2098_v4 = vpop.eup %2097  ;;  %v1035_v19 = vsel %vm1031_vm6, %v2096_v6, 0.0 }
 0x361   : > { %2107 = vrcp.f32 %v1020_v60  ;;  %v1547_v25 = vsel %vm1031_vm6, %v2098_v4, 0.0  ;;  %v1036_v34 = vadd.f32 %v1035_v19, %v1034_v20 }
 0x362   : > { %v1527_v42 = vpop.xlane.xlu1 %1526  ;;  %v1011_v40 = vpop.xlane.xlu0 %1010  ;;  %2109 = vrcp.f32 %v1535_v62  ;;  %v1549_v30 = vadd.f32 %v1548_v22, %v1547_v25 }
 0x363   : > { %v1021_v47 = vmul.f32 %v2088_v55, %v1011_v40  ;;  %v1537_v2 = vmul.f32 %v2086_v63, %v1527_v42  ;;  %2111 = vrcp.f32 %v1536_v0  ;;  %v2100_v17 = vpop.eup %2099 }
 0x364   : > { %v2102_v18 = vpop.eup %2101  ;;  %v1037_v23 = vsel %vm1031_vm6, %v2100_v17, 0.0 }
 0x365   : > { %2113 = vrcp.f32 %v1021_v47  ;;  %v1550_v28 = vsel %vm1031_vm6, %v2102_v18, 0.0  ;;  %v1038_v24 = vadd.f32 %v1037_v23, %v1036_v34 }
 0x366   : > { %v1530_v9 = vpop.xlane.xlu1 %1529  ;;  %v1014_v5 = vpop.xlane.xlu0 %1013  ;;  %2115 = vrcp.f32 %v1537_v2  ;;  %v1551_v31 = vadd.f32 %v1550_v28, %v1549_v30 }
 0x367   : > { %v1538_v12 = vmul.f32 %v2082_v54, %v1530_v9  ;;  %v1022_v15 = vmul.f32 %v2084_v14, %v1014_v5  ;;  %v2104_v49 = vpop.eup %2103 }
 0x368   : > { %v2106_v21 = vpop.eup %2105  ;;  %v1039_v27 = vsel %vm1031_vm6, %v2104_v49, 0.0 }
 0x369   : > { %2117 = vrcp.f32 %v1538_v12  ;;  %v1552_v16 = vsel %vm1031_vm6, %v2106_v21, 0.0  ;;  %v1040_v33 = vadd.f32 %v1039_v27, %v1038_v24 }
 0x36a   : > { %2119 = vrcp.f32 %v1022_v15  ;;  %v1553_v8 = vadd.f32 %v1552_v16, %v1551_v31  ;;  %v1059_v13 = vpop.xlane.xlu1 %1058 }
 0x36b   : > { %v2108_v26 = vpop.eup %2107  ;;  %v1060_v41 = vrot.slane %v1059_v13, 4 }
 0x36c   : > { %v2110_v58 = vpop.eup %2109  ;;  %v1041_v3 = vsel %vm1031_vm6, %v2108_v26, 0.0 }
 0x36d   : > { %v2112_v38 = vpop.eup %2111  ;;  %v1554_v1 = vsel %vm1031_vm6, %v2110_v58, 0.0  ;;  %v1042_v48 = vadd.f32 %v1041_v3, %v1040_v33  ;;  %v1061_v54 = vadd.f32 %v1060_v41, %v1059_v13 }
 0x36e   : > { %v1556_v39 = vsel %vm1031_vm6, %v2112_v38, 0.0  ;;  %v1555_v44 = vadd.f32 %v1554_v1, %v1553_v8  ;;  %v1573_v46 = vpop.xlane.xlu1 %1572 }
 0x36f   : > { %v2114_v32 = vpop.eup %2113  ;;  %v1574_v60 = vrot.slane %v1573_v46, 4  ;;  %v1062_v14 = vrot.slane %v1061_v54, 2 }
 0x370   : > { %v1043_v35 = vsel %vm1031_vm6, %v2114_v32, 0.0  ;;  %v2116_v36 = vpop.eup %2115  ;;  %v1557_v57 = vadd.f32 %v1556_v39, %v1555_v44 }
 0x371   : > { %v1044_v52 = vadd.f32 %v1043_v35, %v1042_v48  ;;  %v1558_v50 = vsel %vm1031_vm6, %v2116_v36, 0.0  ;;  %v1575_v62 = vadd.f32 %v1574_v60, %v1573_v46  ;;  %v1063_v56 = vadd.f32 %v1062_v14, %v1061_v54 }
 0x372   : > { %v1559_v45 = vadd.f32 %v1558_v50, %v1557_v57 }
 0x373   : > { %v2118_v37 = vpop.eup %2117  ;;  %v1576_v42 = vrot.slane %v1575_v62, 2  ;;  %v1064_v9 = vrot.slane %v1063_v56, 1 }
 0x374   : > { %v2120_v29 = vpop.eup %2119  ;;  %v1560_v59 = vsel %vm1031_vm6, %v2118_v37, 0.0 }
 0x375   : > { %v1045_v43 = vsel %vm1031_vm6, %v2120_v29, 0.0  ;;  %v1561_v7 = vadd.f32 %v1560_v59, %v1559_v45  ;;  %v1577_v6 = vadd.f32 %v1576_v42, %v1575_v62  ;;  %v1065_v12 = vadd.f32 %v1064_v9, %v1063_v56 }
 0x376   : > { %v1046_v51 = vadd.f32 %v1045_v43, %v1044_v52 }
 0x377   : > { %v1578_v15 = vrot.slane %v1577_v6, 1 }
 0x378   : > { %1047 = vadd.xlane.f32.xlu0 %v1046_v51 }
 0x379   : > { %v1579_v19 = vadd.f32 %v1578_v15, %v1577_v6 }
 0x37c   : > { %1562 = vadd.xlane.f32.xlu0 %v1561_v7 }
 0x405   : > { %v1048_v63 = vpop.xlane.xlu0 %1047 }
 0x406   : > { %v1049_v0 = vrot.slane %v1048_v63, 4 }
 0x408   : > { %v1050_v55 = vadd.f32 %v1049_v0, %v1048_v63 }
 0x409   : > { %v1563_v40 = vpop.xlane.xlu0 %1562 }
 0x40a   : > { %v1051_v47 = vrot.slane %v1050_v55, 2  ;;  %v1564_v53 = vrot.slane %v1563_v40, 4 }
 0x40c   : > { %v1565_v2 = vadd.f32 %v1564_v53, %v1563_v40  ;;  %v1052_v61 = vadd.f32 %v1051_v47, %v1050_v55 }
 0x40e   : > { %v1566_v5 = vrot.slane %v1565_v2, 2  ;;  %v1053_v4 = vrot.slane %v1052_v61, 1 }
 0x410   : > { %v1567_v10 = vadd.f32 %v1566_v5, %v1565_v2  ;;  %v1054_v11 = vadd.f32 %v1053_v4, %v1052_v61 }
 0x412   : > { %1953 = vpush %v1054_v11  ;;  %v1568_v17 = vrot.slane %v1567_v10, 1 }
 0x413   : > { %1955 = vpush %v1065_v12 }
 0x414   : > { %v1569_v18 = vadd.f32 %v1568_v17, %v1567_v10 }
 0x416   : > { %1957 = vpush %v1569_v18 }
 0x417   : > { %1959 = vpush %v1579_v19 }
 0x443   : > { %s1954_s11 = spop %1953 }
 0x444   : > { %s1956_s12 = spop %1955 }
 0x445   : > { %s1067_s18 = sadd.f32 %s1956_s12, %s1954_s11 }
 0x447   : > { %v1582_v49 = vstv %s1067_s18  ;;  %s1958_s19 = spop %1957 }
 0x448   : > { %1583 = vst [vmem:[%s326_s17] sm:$0x1] %v1582_v49  ;;  %s1960_s20 = spop %1959 }
 0x449   : > { %s1581_s21 = sadd.f32 %s1960_s20, %s1958_s19 }
 0x44b   : > { %v1584_v20 = vstv %s1581_s21 }
 0x44c   : > { %1585 = vst [vmem:[%s326_s17 + $0x1] sm:$0x1] %v1584_v20 }
 0x44d PF: > { %s14_s15 = sadd.s32 1, %s2127_s15  }
 0x44e   : > { %p11_p7 = scmp.ge.s32.totalorder %s14_s15, 4  }
 0x450   :  { %13 = sbr.rel (!%p11_p7) target bundleno = 1 (0x1), region = 72 }

</bundles_post_ra>
